<compile_context>
chip_gen: v7x
topology: tpu7x:2x2x1
jax: 0.10.0
libtpu: 0.0.40
codegen_flags: <defaults>
</compile_context>

<pallas_src>
import functools

import jax
import jax.numpy as jnp
from jax.experimental import pallas as pl
from jax.experimental.pallas import tpu as pltpu

POS_WEIGHT = 2.0  # nn.BCEWithLogitsLoss(pos_weight=torch.tensor([2.0]))
_LANES = 128


def _cdiv(a, b):
    return -(-a // b)


def _min_sublanes(dtype):
    """Minimum sublane multiple for a packed dtype: 8 (f32), 16 (bf16), 32 (i8/fp8)."""
    itemsize = jnp.dtype(dtype).itemsize
    return max(8, 32 // max(1, itemsize))


def _default_core_splits():
    """2 on chips with two TensorCores (v4/v5p megacore, v7x), else 1."""
    try:
        info = pltpu.get_tpu_info()
        for attr in ("num_tensorcores", "tensorcore_count", "num_cores",
                     "core_count", "num_cores_per_chip"):
            val = getattr(info, attr, None)
            if isinstance(val, int) and val > 0:
                return min(2, val)
    except Exception:
        pass
    try:
        kind = jax.devices()[0].device_kind.lower()
        if any(tag in kind for tag in ("v4", "v5p", "v7")):
            return 2
    except Exception:
        pass
    return 1


def _bce_kernel(x_ref, y_ref, out_ref, acc_ref, *, n_elems, pos_weight,
                tile_rows, blocks_per_core, first_tail_block):
    c = pl.program_id(0)          # core-split index ("parallel")
    i = pl.program_id(1)          # block index within this core ("arbitrary")

    @pl.when(i == 0)
    def _init():
        acc_ref[...] = jnp.zeros_like(acc_ref)

    x = x_ref[...].astype(jnp.float32)
    y = y_ref[...].astype(jnp.float32)

    # PyTorch-stable BCEWithLogits:
    #   log_weight = 1 + (pos_weight - 1) * y
    #   loss = (1 - y) * x + log_weight * (log1p(exp(-|x|)) + max(-x, 0))
    log_weight = 1.0 + (pos_weight - 1.0) * y
    softplus_neg_abs = jnp.log1p(jnp.exp(-jnp.abs(x))) + jnp.maximum(-x, 0.0)
    loss = (1.0 - y) * x + log_weight * softplus_neg_abs

    gb = c * blocks_per_core + i          # global block index
    block_elems = tile_rows * _LANES

    def _fold(vals):
        # Fold the (tile_rows, 128) tile into the fixed (8, 128) accumulator.
        return vals.reshape(tile_rows // 8, 8, _LANES).sum(axis=0)

    # Interior blocks: fully inside [0, n_elems) -> no masking work at all.
    @pl.when(gb < first_tail_block)
    def _interior():
        acc_ref[...] += _fold(loss)

    # Tail blocks: overlap or lie entirely past n_elems (includes the partial
    # final block and any fully-padded blocks from the core-split rounding).
    @pl.when(gb >= first_tail_block)
    def _tail():
        rem = n_elems - gb * block_elems              # may be <= 0
        row = jax.lax.broadcasted_iota(jnp.int32, (tile_rows, _LANES), 0)
        lane = jax.lax.broadcasted_iota(jnp.int32, (tile_rows, _LANES), 1)
        local = row * _LANES + lane                   # < tile_rows*128, int32-safe
        acc_ref[...] += _fold(jnp.where(local < rem, loss, 0.0))

    @pl.when(i == pl.num_programs(1) - 1)
    def _flush():
        out_ref[...] = acc_ref[...][None]             # (1, 8, 128) partials


def bce_with_logits_loss(x, y, *, pos_weight=POS_WEIGHT, tile_rows=4096,
                         core_splits=None):
    """Mean BCE-with-logits loss over all elements (matches nn.BCEWithLogitsLoss
    with pos_weight=2.0, reduction='mean'). Works for arbitrary shapes; accepts
    f32 / bf16 / lower-precision inputs (upcast to f32 in-kernel)."""
    assert x.shape == y.shape
    n_elems = x.size
    assert n_elems > 0

    if core_splits is None:
        core_splits = _default_core_splits()

    # Dtype-aware sublane minimum (8 for f32, 16 for bf16, 32 for int8/fp8).
    sub = max(_min_sublanes(x.dtype), _min_sublanes(y.dtype))

    rows_valid = _cdiv(n_elems, _LANES)
    rows_padded = _cdiv(rows_valid, sub) * sub        # small pad only

    # Tile: multiple of the packed-dtype sublane minimum, never larger than the data.
    tile_rows = max(sub, (min(tile_rows, rows_padded) // sub) * sub)
    block_elems = tile_rows * _LANES

    if n_elems >= 2**31 - 4 * block_elems:
        raise ValueError("bce_with_logits_loss: size exceeds int32 index range")

    blocks_total = _cdiv(rows_padded, tile_rows)
    core_splits = max(1, min(core_splits, blocks_total))
    blocks_per_core = _cdiv(blocks_total, core_splits)
    first_tail_block = n_elems // block_elems         # first block needing the mask

    n_padded = rows_padded * _LANES
    xf = x.reshape(-1)
    yf = y.reshape(-1)
    if n_padded != n_elems:
        xf = jnp.pad(xf, (0, n_padded - n_elems))
        yf = jnp.pad(yf, (0, n_padded - n_elems))
    x2 = xf.reshape(rows_padded, _LANES)
    y2 = yf.reshape(rows_padded, _LANES)

    kernel = functools.partial(
        _bce_kernel,
        n_elems=n_elems,
        pos_weight=float(pos_weight),
        tile_rows=tile_rows,
        blocks_per_core=blocks_per_core,
        first_tail_block=first_tail_block,
    )

    def in_map(c, i):
        return (c * blocks_per_core + i, 0)

    partials = pl.pallas_call(
        kernel,
        out_shape=jax.ShapeDtypeStruct((core_splits, 8, _LANES), jnp.float32),
        grid_spec=pltpu.PrefetchScalarGridSpec(
            num_scalar_prefetch=0,
            grid=(core_splits, blocks_per_core),
            in_specs=[
                pl.BlockSpec((tile_rows, _LANES), in_map),
                pl.BlockSpec((tile_rows, _LANES), in_map),
            ],
            out_specs=pl.BlockSpec((1, 8, _LANES), lambda c, i: (c, 0, 0)),
            scratch_shapes=[pltpu.VMEM((8, _LANES), jnp.float32)],
        ),
        compiler_params=pltpu.CompilerParams(
            dimension_semantics=("parallel", "arbitrary"),
            vmem_limit_bytes=48 * 1024 * 1024,
        ),
    )(x2, y2)

    # Tiny final reduction (core_splits * 8 * 128 elements) + mean divisor.
    return partials.sum() / jnp.float32(n_elems)


def _reference(x, y, pos_weight=POS_WEIGHT):
    x = x.astype(jnp.float32)
    y = y.astype(jnp.float32)
    log_weight = 1.0 + (pos_weight - 1.0) * y
    softplus_neg_abs = jnp.log1p(jnp.exp(-jnp.abs(x))) + jnp.maximum(-x, 0.0)
    loss = (1.0 - y) * x + log_weight * softplus_neg_abs
    return jnp.mean(loss)


if __name__ == "__main__":
    key = jax.random.PRNGKey(0)

    # Case 1: NCHW logits/targets, size divisible by 128.
    kx, ky, key = jax.random.split(key, 3)
    shape = (2, 4, 16, 16)
    x = jax.random.normal(kx, shape, dtype=jnp.float32)
    y = (jax.random.uniform(ky, shape) > 0.5).astype(jnp.float32)
    loss = bce_with_logits_loss(x, y)
    jax.block_until_ready(loss)
    ref = _reference(x, y)
    assert jnp.allclose(loss, ref, rtol=1e-5, atol=1e-6), (loss, ref)

    # Case 2: ragged shape (exercises the gated tail mask + small padding).
    kx2, ky2, key = jax.random.split(key, 3)
    shape2 = (3, 5, 7, 11)
    x2 = jax.random.normal(kx2, shape2, dtype=jnp.float32)
    y2 = (jax.random.uniform(ky2, shape2) > 0.5).astype(jnp.float32)
    loss2 = bce_with_logits_loss(x2, y2)
    jax.block_until_ready(loss2)
    ref2 = _reference(x2, y2)
    assert jnp.allclose(loss2, ref2, rtol=1e-5, atol=1e-6), (loss2, ref2)

    # Case 3: bf16 logits (exercises dtype-aware tiling; reference uses the
    # same bf16-cast values so only summation order differs).
    kx3, ky3 = jax.random.split(key)
    x3 = jax.random.normal(kx3, shape, dtype=jnp.float32).astype(jnp.bfloat16)
    y3 = (jax.random.uniform(ky3, shape) > 0.5).astype(jnp.float32)
    loss3 = bce_with_logits_loss(x3, y3)
    jax.block_until_ready(loss3)
    ref3 = _reference(x3, y3)
    assert jnp.allclose(loss3, ref3, rtol=1e-4, atol=1e-5), (loss3, ref3)

    print("KERNEL_OK")
</pallas_src>

<mosaic_0001>
module attributes {stable_mosaic.version = 11 : i64} {
  func.func @_bce_kernel(%arg0: i32, %arg1: i32, %arg2: memref<16x128xf32, #tpu.memory_space<vmem>>, %arg3: memref<16x128xf32, #tpu.memory_space<vmem>>, %arg4: memref<1x8x128xf32, #tpu.memory_space<vmem>>, %arg5: memref<8x128xf32, #tpu.memory_space<vmem>>) attributes {dimension_semantics = [#tpu.dimension_semantics<parallel>, #tpu.dimension_semantics<arbitrary>], iteration_bounds = array<i64: 1, 1>, scalar_prefetch = 0 : i64, scratch_operands = 1 : i64, tpu.core_type = #tpu.core_type<tc>, window_params = [{transform_indices = @transform_0, window_bounds = array<i64: 16, 128>}, {transform_indices = @transform_1, window_bounds = array<i64: 16, 128>}, {transform_indices = @transform_2, window_bounds = array<i64: 1, 8, 128>}]} {
    %c0_i32 = arith.constant 0 : i32
    %0 = arith.cmpi eq, %arg1, %c0_i32 : i32
    %1 = arith.extui %0 : i1 to i32
    %c0_i32_0 = arith.constant 0 : i32
    %2 = arith.cmpi ne, %1, %c0_i32_0 : i32
    scf.if %2 {
      %cst_15 = arith.constant 0.000000e+00 : f32
      %35 = vector.broadcast %cst_15 : f32 to vector<8x128xf32>
      %c0_16 = arith.constant 0 : index
      %c0_17 = arith.constant 0 : index
      %36 = vector.load %arg5[%c0_16, %c0_17] : memref<8x128xf32, #tpu.memory_space<vmem>>, vector<8x128xf32>
      tpu.vector_store %arg5[%c0_16, %c0_17], %35 {strides = array<i32>} : memref<8x128xf32, #tpu.memory_space<vmem>>, vector<8x128xf32>,
    } else {
    }
    %c0 = arith.constant 0 : index
    %c0_1 = arith.constant 0 : index
    %3 = vector.load %arg2[%c0, %c0_1] : memref<16x128xf32, #tpu.memory_space<vmem>>, vector<16x128xf32>
    %c0_2 = arith.constant 0 : index
    %c0_3 = arith.constant 0 : index
    %4 = vector.load %arg3[%c0_2, %c0_3] : memref<16x128xf32, #tpu.memory_space<vmem>>, vector<16x128xf32>
    %cst = arith.constant 1.000000e+00 : f32
    %5 = vector.broadcast %cst : f32 to vector<16x128xf32>
    %6 = arith.mulf %5, %4 : vector<16x128xf32>
    %cst_4 = arith.constant 1.000000e+00 : f32
    %7 = vector.broadcast %cst_4 : f32 to vector<16x128xf32>
    %8 = arith.addf %7, %6 : vector<16x128xf32>
    %9 = math.absf %3 : vector<16x128xf32>
    %cst_5 = arith.constant 0.000000e+00 : f32
    %10 = vector.broadcast %cst_5 : f32 to vector<16x128xf32>
    %11 = arith.subf %10, %9 : vector<16x128xf32>
    %12 = math.exp %11 : vector<16x128xf32>
    %13 = math.log1p %12 : vector<16x128xf32>
    %cst_6 = arith.constant 0.000000e+00 : f32
    %14 = vector.broadcast %cst_6 : f32 to vector<16x128xf32>
    %15 = arith.subf %14, %3 : vector<16x128xf32>
    %cst_7 = arith.constant 0.000000e+00 : f32
    %16 = vector.broadcast %cst_7 : f32 to vector<16x128xf32>
    %17 = arith.maximumf %15, %16 : vector<16x128xf32>
    %18 = arith.addf %13, %17 : vector<16x128xf32>
    %cst_8 = arith.constant 1.000000e+00 : f32
    %19 = vector.broadcast %cst_8 : f32 to vector<16x128xf32>
    %20 = arith.subf %19, %4 : vector<16x128xf32>
    %21 = arith.mulf %20, %3 : vector<16x128xf32>
    %22 = arith.mulf %8, %18 : vector<16x128xf32>
    %23 = arith.addf %21, %22 : vector<16x128xf32>
    %c1_i32 = arith.constant 1 : i32
    %24 = arith.muli %arg0, %c1_i32 : i32
    %25 = arith.addi %24, %arg1 : i32
    %c1_i32_9 = arith.constant 1 : i32
    %26 = arith.cmpi slt, %25, %c1_i32_9 : i32
    %27 = arith.extui %26 : i1 to i32
    %c0_i32_10 = arith.constant 0 : i32
    %28 = arith.cmpi ne, %27, %c0_i32_10 : i32
    scf.if %28 {
      %c0_15 = arith.constant 0 : index
      %c0_16 = arith.constant 0 : index
      %35 = vector.load %arg5[%c0_15, %c0_16] : memref<8x128xf32, #tpu.memory_space<vmem>>, vector<8x128xf32>
      %36 = vector.shape_cast %23 : vector<16x128xf32> to vector<2x8x128xf32>
      %cst_17 = arith.constant dense<0.000000e+00> : vector<8x128xf32>
      %37 = vector.multi_reduction <add>, %36, %cst_17 [0] : vector<2x8x128xf32> to vector<8x128xf32>
      %38 = arith.addf %35, %37 : vector<8x128xf32>
      %c0_18 = arith.constant 0 : index
      %c0_19 = arith.constant 0 : index
      %39 = vector.load %arg5[%c0_18, %c0_19] : memref<8x128xf32, #tpu.memory_space<vmem>>, vector<8x128xf32>
      tpu.vector_store %arg5[%c0_18, %c0_19], %38 {strides = array<i32>} : memref<8x128xf32, #tpu.memory_space<vmem>>, vector<8x128xf32>,
    } else {
    }
    %c1_i32_11 = arith.constant 1 : i32
    %29 = arith.cmpi sge, %25, %c1_i32_11 : i32
    %30 = arith.extui %29 : i1 to i32
    %c0_i32_12 = arith.constant 0 : i32
    %31 = arith.cmpi ne, %30, %c0_i32_12 : i32
    scf.if %31 {
      %c2048_i32 = arith.constant 2048 : i32
      %35 = arith.muli %25, %c2048_i32 : i32
      %c2048_i32_15 = arith.constant 2048 : i32
      %36 = arith.subi %c2048_i32_15, %35 : i32
      %37 = tpu.iota {dimensions = array<i32: 0>} : vector<16x128xi32>
      %38 = tpu.iota {dimensions = array<i32: 1>} : vector<16x128xi32>
      %c128_i32 = arith.constant 128 : i32
      %39 = vector.broadcast %c128_i32 : i32 to vector<16x128xi32>
      %40 = arith.muli %37, %39 : vector<16x128xi32>
      %41 = arith.addi %40, %38 : vector<16x128xi32>
      %c0_16 = arith.constant 0 : index
      %c0_17 = arith.constant 0 : index
      %42 = vector.load %arg5[%c0_16, %c0_17] : memref<8x128xf32, #tpu.memory_space<vmem>>, vector<8x128xf32>
      %43 = vector.broadcast %36 : i32 to vector<16x128xi32>
      %44 = arith.cmpi slt, %41, %43 : vector<16x128xi32>
      %cst_18 = arith.constant 0.000000e+00 : f32
      %45 = vector.broadcast %cst_18 : f32 to vector<16x128xf32>
      %46 = arith.select %44, %23, %45 : vector<16x128xi1>, vector<16x128xf32>
      %47 = vector.shape_cast %46 : vector<16x128xf32> to vector<2x8x128xf32>
      %cst_19 = arith.constant dense<0.000000e+00> : vector<8x128xf32>
      %48 = vector.multi_reduction <add>, %47, %cst_19 [0] : vector<2x8x128xf32> to vector<8x128xf32>
      %49 = arith.addf %42, %48 : vector<8x128xf32>
      %c0_20 = arith.constant 0 : index
      %c0_21 = arith.constant 0 : index
      %50 = vector.load %arg5[%c0_20, %c0_21] : memref<8x128xf32, #tpu.memory_space<vmem>>, vector<8x128xf32>
      tpu.vector_store %arg5[%c0_20, %c0_21], %49 {strides = array<i32>} : memref<8x128xf32, #tpu.memory_space<vmem>>, vector<8x128xf32>,
    } else {
    }
    %c0_i32_13 = arith.constant 0 : i32
    %32 = arith.cmpi eq, %arg1, %c0_i32_13 : i32
    %33 = arith.extui %32 : i1 to i32
    %c0_i32_14 = arith.constant 0 : i32
    %34 = arith.cmpi ne, %33, %c0_i32_14 : i32
    scf.if %34 {
      %c0_15 = arith.constant 0 : index
      %c0_16 = arith.constant 0 : index
      %35 = vector.load %arg5[%c0_15, %c0_16] : memref<8x128xf32, #tpu.memory_space<vmem>>, vector<8x128xf32>
      %36 = vector.shape_cast %35 : vector<8x128xf32> to vector<1x8x128xf32>
      %c0_17 = arith.constant 0 : index
      %c0_18 = arith.constant 0 : index
      %c0_19 = arith.constant 0 : index
      %37 = vector.load %arg4[%c0_17, %c0_18, %c0_19] : memref<1x8x128xf32, #tpu.memory_space<vmem>>, vector<1x8x128xf32>
      tpu.vector_store %arg4[%c0_17, %c0_18, %c0_19], %36 {strides = array<i32>} : memref<1x8x128xf32, #tpu.memory_space<vmem>>, vector<1x8x128xf32>,
    } else {
    }
    return
  }
  func.func @transform_0(%arg0: i32, %arg1: i32) -> (i32, i32) {
    %c1_i32 = arith.constant 1 : i32
    %0 = arith.muli %arg0, %c1_i32 : i32
    %1 = arith.addi %0, %arg1 : i32
    %c0_i32 = arith.constant 0 : i32
    %c0_i32_0 = arith.constant 0 : i32
    return %1, %c0_i32 : i32, i32
  }
  func.func @transform_1(%arg0: i32, %arg1: i32) -> (i32, i32) {
    %c1_i32 = arith.constant 1 : i32
    %0 = arith.muli %arg0, %c1_i32 : i32
    %1 = arith.addi %0, %arg1 : i32
    %c0_i32 = arith.constant 0 : i32
    %c0_i32_0 = arith.constant 0 : i32
    return %1, %c0_i32 : i32, i32
  }
  func.func @transform_2(%arg0: i32, %arg1: i32) -> (i32, i32, i32) {
    %c0_i32 = arith.constant 0 : i32
    %c0_i32_0 = arith.constant 0 : i32
    %c0_i32_1 = arith.constant 0 : i32
    return %arg0, %c0_i32, %c0_i32_0 : i32, i32, i32
  }
}

</mosaic_0001>

<bundles_post_ra>
// kernel: tpu_custom_call.1
= control target key start
LH: loop header
LB: loop body
LE: loop exit
PB: predicated region body
PF: predicated region fallthrough
CT: control target
= control target key end

     0   :  { %7 = vsyncpa [#allocation4], 0  ;;  %s298_s0 = inlined_call_operand.hbm [shape: f32[16,128], index: 0, kind: input, shape index: {}]   ;;  %s299_s1 = inlined_call_operand.hbm [shape: f32[16,128], index: 1, kind: input, shape index: {}]   ;;  %s300_s2 = inlined_call_operand.hbm [shape: f32[1,8,128], index: 2, kind: output, shape index: {}]  }
   0x1   :  { %8 = vsyncpa [#allocation7], 0 }
   0x2   :  { %9 = vsyncpa [#allocation5], 0  ;;  %s242_s9 = smov [#allocation3]   ;;  %s170_s13 = scalar_lea.hbm %s298_s0, 256 }
   0x3   :  { %s19_s10 = sshll.u32 %s242_s9, 4  ;;  %p171_p0 = scmp.ne.s32.totalorder %s298_s0, %s170_s13  ;;  %s20_s10 = int_to_ptr.vmem [resolvable:$true] %s19_s10 }
   0x4   :  { %p174_p1 = scmp.lt.u32.totalorder %s170_s13, %s298_s0 }
   0x6   :  { %p176_p2 = pnand %p174_p1, %p171_p0 }
   0x8   :  { %179 = shalt.err (!%p176_p2)
}
   0x9   :  { %s180_s18 = scalar_lea.vmem %s20_s10, 256  ;;  %p185_p4 = scmp.lt.s32.totalorder %s20_s10, %s20_s10 }
   0xa   :  { %p181_p3 = scmp.ne.s32.totalorder %s20_s10, %s180_s18  ;;  %p186_p5 = scmp.lt.s32.totalorder %s180_s18, %s180_s18 }
   0xc   :  { %p187_p6 = por %p186_p5, %p185_p4 }
   0xe   :  { %p188_p7 = pnand %p187_p6, %p181_p3 }
  0x10   :  { %191 = shalt.err (!%p188_p7)
}
  0x11   :  { %s243_s19 = smov 128   ;;  %s244_s20 = smov 8  }
  0x12   :  { %25 = dma.hbm_to_vmem [thread:$0]  %s298_s0, 256, %s20_s10, [#allocation4], %s243_s19, %s243_s19, %s244_s20  }
  0x13   :  { %s245_s23 = smov [#allocation6]   ;;  %s192_s27 = scalar_lea.hbm %s299_s1, 256 }
  0x14   :  { %s35_s24 = sshll.u32 %s245_s23, 4  ;;  %p193_p8 = scmp.ne.s32.totalorder %s299_s1, %s192_s27  ;;  %s36_s24 = int_to_ptr.vmem [resolvable:$true] %s35_s24 }
  0x15   :  { %p196_p9 = scmp.lt.u32.totalorder %s192_s27, %s299_s1 }
  0x17   :  { %p198_p10 = pnand %p196_p9, %p193_p8 }
  0x19   :  { %201 = shalt.err (!%p198_p10)
}
  0x1a   :  { %s202_s4 = scalar_lea.vmem %s36_s24, 256  ;;  %p207_p12 = scmp.lt.s32.totalorder %s36_s24, %s36_s24 }
  0x1b   :  { %p203_p11 = scmp.ne.s32.totalorder %s36_s24, %s202_s4  ;;  %p208_p13 = scmp.lt.s32.totalorder %s202_s4, %s202_s4 }
  0x1d   :  { %p209_p0 = por %p208_p13, %p207_p12 }
  0x1f   :  { %p210_p1 = pnand %p209_p0, %p203_p11 }
  0x21   :  { %213 = shalt.err (!%p210_p1)
}
  0x22   :  { %41 = dma.hbm_to_vmem [thread:$0]  %s299_s1, 256, %s36_s24, [#allocation7], %s243_s19, %s243_s19, %s244_s20  }
  0x23   :  { %236 = dma.done.wait [#allocation4], 256  }
  0x24   :  { %237 = vsyncadd [#allocation4], 4294967040 }
  0x25   :  { %238 = dma.done.wait [#allocation7], 256  }
  0x26   :  { %239 = vsyncadd [#allocation7], 4294967040  ;;  %v57_v0 = vld [vmem:[#allocation3] sm:$0xff]  ;;  %v58_v1 = vld [vmem:[#allocation3 + $0x8] sm:$0xff]  ;;  %s246_s1 = smov [#allocation8]  }
  0x27   :  { %v63_v2 = vand.u32 2147483647, %v57_v0  ;;  %v64_v3 = vand.u32 2147483647, %v58_v1  ;;  %v89_v17 = vsub.f32 0.0, %v57_v0  ;;  %v59_v18 = vld [vmem:[#allocation6] sm:$0xff] }
  0x28   :  { %v90_v20 = vsub.f32 0.0, %v58_v1  ;;  %v60_v21 = vld [vmem:[#allocation6 + $0x8] sm:$0xff]  ;;  %v95_v26 = vsub.f32 1.0, %v59_v18  ;;  %v61_v31 = vadd.f32 1.0, %v59_v18  ;;  %s147_s6 = sshll.u32 %s246_s1, 4  ;;  %s148_s6 = int_to_ptr.vmem [resolvable:$true] %s147_s6 }
  0x29   :  { %v65_v4 = vsub.f32 0.0, %v63_v2  ;;  %v66_v5 = vsub.f32 0.0, %v64_v3  ;;  %v91_v25 = vmax.f32 %v89_v17, 0.0  ;;  %v96_v30 = vsub.f32 1.0, %v60_v21  ;;  %s214_s7 = scalar_lea.vmem %s148_s6, 128  ;;  %p219_p3 = scmp.lt.s32.totalorder %s148_s6, %s148_s6 }
  0x2a   :  { %v92_v29 = vmax.f32 %v90_v20, 0.0  ;;  %v62_v33 = vadd.f32 1.0, %v60_v21  ;;  %v97_v37 = vmul.f32 %v95_v26, %v57_v0  ;;  %p215_p2 = scmp.ne.s32.totalorder %s148_s6, %s214_s7  ;;  %p220_p4 = scmp.lt.s32.totalorder %s214_s7, %s214_s7 }
  0x2b   :  { %v67_v6 = vmul.f32 1.442695, %v65_v4  ;;  %v69_v7 = vmul.f32 1.442695, %v66_v5  ;;  %v98_v39 = vmul.f32 %v96_v30, %v58_v1 }
  0x2c   :  { %p221_p5 = por %p220_p4, %p219_p3 }
  0x2d   :  { %162 = vpow2.f32 %v67_v6 }
  0x2e   :  { %164 = vpow2.f32 %v69_v7  ;;  %p222_p6 = pnand %p221_p5, %p215_p2 }
  0x37   :  { %v163_v8 = vpop.eup %162 }
  0x38   :  { %v165_v9 = vpop.eup %164  ;;  %v71_v10 = vadd.f32 1.0, %v163_v8  ;;  %v74_v12 = vmul.f32 -0.5, %v163_v8  ;;  %v77_v15 = vand.u32 2147483647, %v163_v8 }
  0x39   :  { %v80_v11 = vadd.f32 1.0, %v165_v9  ;;  %v83_v13 = vmul.f32 -0.5, %v165_v9  ;;  %v86_v19 = vand.u32 2147483647, %v165_v9 }
  0x3a   :  { %166 = vlog2.f32 %v71_v10  ;;  %v75_v14 = vadd.f32 1.0, %v74_v12  ;;  %vm78_vm0 = vcmp.lt.f32.partialorder %v77_v15, 0.0004427343 }
  0x3b   :  { %168 = vlog2.f32 %v80_v11  ;;  %v84_v16 = vadd.f32 1.0, %v83_v13  ;;  %vm87_vm1 = vcmp.lt.f32.partialorder %v86_v19, 0.0004427343 }
  0x3c   :  { %v76_v22 = vmul.f32 %v163_v8, %v75_v14 }
  0x3d   :  { %v85_v24 = vmul.f32 %v165_v9, %v84_v16 }
  0x44   :  { %v167_v23 = vpop.eup %166 }
  0x45   :  { %v169_v27 = vpop.eup %168  ;;  %v73_v28 = vmul.f32 0.6931472, %v167_v23 }
  0x46   :  { %v82_v32 = vmul.f32 0.6931472, %v169_v27 }
  0x47   :  { %v79_v34 = vsel %vm78_vm0, %v76_v22, %v73_v28 }
  0x48   :  { %v88_v35 = vsel %vm87_vm1, %v85_v24, %v82_v32  ;;  %v93_v36 = vadd.f32 %v91_v25, %v79_v34 }
  0x49   :  { %v94_v38 = vadd.f32 %v92_v29, %v88_v35 }
  0x4a   :  { %v99_v40 = vmul.f32 %v93_v36, %v61_v31 }
  0x4b   :  { %v100_v41 = vmul.f32 %v94_v38, %v62_v33 }
  0x4c   :  { %v101_v42 = vadd.f32 %v99_v40, %v97_v37 }
  0x4d   :  { %v102_v43 = vadd.f32 %v100_v41, %v98_v39 }
  0x4f   :  { %v109_v44 = vadd.f32 %v102_v43, %v101_v42 }
  0x51   :  { %140 = vst [vmem:[#allocation8] sm:$0xff] %v109_v44 }
  0x52   :  { %225 = shalt.err (!%p222_p6)
}
  0x53   :  { %s226_s10 = scalar_lea.hbm %s300_s2, 128 }
  0x54   :  { %p227_p7 = scmp.ne.s32.totalorder %s300_s2, %s226_s10  ;;  %p230_p8 = scmp.lt.u32.totalorder %s226_s10, %s300_s2 }
  0x56   :  { %p232_p9 = pnand %p230_p8, %p227_p7 }
  0x58   :  { %235 = shalt.err (!%p232_p9)
}
  0x59   :  { %150 = dma.vmem_to_hbm [thread:$0]  %s148_s6, 128, %s300_s2, [#allocation5]  }
  0x5a   :  { %240 = dma.done.wait [#allocation5], 128  }
  0x5b   :  { %241 = vsyncadd [#allocation5], 4294967168 }
  0x5c   :  { %154 = vsyncpa [#allocation4], 1 }
  0x5d   :  { %155 = vsyncpa [#allocation7], 1 }
  0x5e   :  { %156 = vsyncpa [#allocation5], 1 }

</bundles_post_ra>
